<compile_context>
chip_gen: v5e
topology: v5e:2x2
jax: 0.10.0
libtpu: 0.0.40
codegen_flags: <defaults>
</compile_context>

<pallas_src>
import jax
import jax.numpy as jnp
from jax.experimental import pallas as pl
from jax.experimental.pallas import tpu as pltpu


def _round_up(x, m):
    return (x + m - 1) // m * m


def _ffn_kernel(x_ref, w1_ref, w2_ref, o_ref, acc_ref):
    # grid = (row_tiles, k_tiles); k = MID-reduction axis for the 2nd matmul,
    # innermost so the f32 accumulator stays resident per row tile.
    k = pl.program_id(1)

    @pl.when(k == 0)
    def _():
        acc_ref[...] = jnp.zeros_like(acc_ref)

    # linear1 + ReLU for this MID block. The reduction over d_model is NOT
    # tiled, so these are *complete* columns of h -> per-block ReLU is exact.
    h = jnp.dot(x_ref[...], w1_ref[...], preferred_element_type=jnp.float32)
    h = jnp.maximum(h, 0.0)

    # linear2: partial reduction over MID, accumulated in f32 VMEM scratch.
    acc_ref[...] += jnp.dot(h.astype(w2_ref.dtype), w2_ref[...],
                            preferred_element_type=jnp.float32)

    @pl.when(k == pl.num_programs(1) - 1)
    def _():
        # ReLU after linear2; dropout2 is identity in eval mode.
        o_ref[...] = jnp.maximum(acc_ref[...], 0.0).astype(o_ref.dtype)


def feed_forward(x, w1, w2, *, tile_n=None, tile_k=None):
    """x: (..., d_model); w1: (d_model, mid); w2: (mid, d_model).

    Weights are stored (in_features, out_features), i.e. already transposed
    relative to nn.Linear.weight, so the kernel computes x @ W == x @ weight.T.
    """
    orig_shape = x.shape
    d = orig_shape[-1]
    mid = w1.shape[1]
    assert w1.shape == (d, mid) and w2.shape == (mid, d)

    x2 = x.reshape(-1, d)
    n = x2.shape[0]

    # Lane-dense / MXU-aligned padded extents.
    d_pad = _round_up(d, 128)
    mid_pad = _round_up(mid, 128)

    if tile_n is None:
        # >=128 MXU rows; 256 preferred on v6e/v7x when there is enough work.
        tile_n = 256 if n >= 256 else 128
    n_pad = _round_up(n, tile_n)

    if tile_k is None:
        tile_k = 512 if mid_pad % 512 == 0 else (256 if mid_pad % 256 == 0 else 128)
    assert mid_pad % tile_k == 0

    # Zero padding is exact: padded x columns hit zero W1 rows, padded MID
    # columns give relu(0)=0 which contributes nothing through W2, and padded
    # output rows/cols are sliced off below.
    xp = jnp.pad(x2, ((0, n_pad - n), (0, d_pad - d)))
    w1p = jnp.pad(w1, ((0, d_pad - d), (0, mid_pad - mid)))
    w2p = jnp.pad(w2, ((0, mid_pad - mid), (0, d_pad - d)))

    grid = (n_pad // tile_n, mid_pad // tile_k)

    # Explicit VMEM budget: double-buffered pipelined tiles + resident f32 acc.
    xi = jnp.dtype(x.dtype).itemsize
    w1i = jnp.dtype(w1.dtype).itemsize
    w2i = jnp.dtype(w2.dtype).itemsize
    tiles_bytes = (2 * tile_n * d_pad * xi          # x tile (double-buffered)
                   + 2 * d_pad * tile_k * w1i       # W1 block
                   + 2 * tile_k * d_pad * w2i       # W2 block
                   + 2 * tile_n * d_pad * xi        # out tile
                   + tile_n * d_pad * 4)            # f32 accumulator
    vmem_limit = int(min(max(2 * tiles_bytes, 32 * 2**20), 64 * 2**20))

    # Advisory cost hint for XLA scheduling around the custom call.
    flops = 4 * n_pad * d_pad * mid_pad             # 2 matmuls, 2*N*D*MID each
    bytes_accessed = (2 * n_pad * d_pad * xi        # x in + y out
                      + grid[0] * (d_pad * mid_pad * w1i   # weights restreamed
                                   + mid_pad * d_pad * w2i))  # per row tile
    cost = pl.CostEstimate(flops=flops, transcendentals=0,
                           bytes_accessed=int(bytes_accessed))

    out = pl.pallas_call(
        _ffn_kernel,
        out_shape=jax.ShapeDtypeStruct((n_pad, d_pad), x.dtype),
        grid_spec=pltpu.PrefetchScalarGridSpec(
            num_scalar_prefetch=0,
            grid=grid,                                   # (rows, k) — k innermost
            in_specs=[
                pl.BlockSpec((tile_n, d_pad), lambda i, k: (i, 0)),  # x rows
                pl.BlockSpec((d_pad, tile_k), lambda i, k: (0, k)),  # W1 block
                pl.BlockSpec((tile_k, d_pad), lambda i, k: (k, 0)),  # W2 block
            ],
            out_specs=pl.BlockSpec((tile_n, d_pad), lambda i, k: (i, 0)),
            scratch_shapes=[pltpu.VMEM((tile_n, d_pad), jnp.float32)],
        ),
        compiler_params=pltpu.CompilerParams(
            dimension_semantics=("parallel", "arbitrary"),
            vmem_limit_bytes=vmem_limit),
        cost_estimate=cost,
    )(xp, w1p, w2p)

    return out[:n, :d].reshape(orig_shape)


if __name__ == "__main__":
    key = jax.random.PRNGKey(0)
    k_x, k_w1, k_w2 = jax.random.split(key, 3)

    batch, seq, d_model = 2, 8, 32          # input_len = 32
    mid = d_model * 4                       # mid_size = 128

    # Deterministic init matching nn.Linear's U(-1/sqrt(fan_in), 1/sqrt(fan_in)).
    x = jax.random.normal(k_x, (batch, seq, d_model), dtype=jnp.float32)
    w1 = jax.random.uniform(k_w1, (d_model, mid), dtype=jnp.float32,
                            minval=-1.0 / jnp.sqrt(d_model),
                            maxval=1.0 / jnp.sqrt(d_model))
    w2 = jax.random.uniform(k_w2, (mid, d_model), dtype=jnp.float32,
                            minval=-1.0 / jnp.sqrt(mid),
                            maxval=1.0 / jnp.sqrt(mid))

    # f32 path — strict check against plain-JAX reference of the same math.
    out = feed_forward(x, w1, w2)
    jax.block_until_ready(out)
    ref = jnp.maximum(jnp.maximum(x @ w1, 0.0) @ w2, 0.0)
    assert out.shape == x.shape
    assert jnp.allclose(out, ref, atol=1e-4, rtol=1e-5)

    # bf16 MXU path (production config) — loose check vs. f32 reference.
    out_bf16 = feed_forward(x.astype(jnp.bfloat16),
                            w1.astype(jnp.bfloat16),
                            w2.astype(jnp.bfloat16))
    jax.block_until_ready(out_bf16)
    assert jnp.allclose(out_bf16.astype(jnp.float32), ref, atol=1e-1, rtol=1e-1)

    print("KERNEL_OK")
</pallas_src>

<mosaic_0001>
module attributes {stable_mosaic.version = 11 : i64} {
  func.func @_ffn_kernel(%arg0: i32, %arg1: i32, %arg2: memref<128x128xf32, #tpu.memory_space<vmem>>, %arg3: memref<128x128xf32, #tpu.memory_space<vmem>>, %arg4: memref<128x128xf32, #tpu.memory_space<vmem>>, %arg5: memref<128x128xf32, #tpu.memory_space<vmem>>, %arg6: memref<128x128xf32, #tpu.memory_space<vmem>>) attributes {dimension_semantics = [#tpu.dimension_semantics<parallel>, #tpu.dimension_semantics<arbitrary>], iteration_bounds = array<i64: 1, 1>, scalar_prefetch = 0 : i64, scratch_operands = 1 : i64, tpu.core_type = #tpu.core_type<tc>, window_params = [{transform_indices = @transform_0, window_bounds = array<i64: 128, 128>}, {transform_indices = @transform_1, window_bounds = array<i64: 128, 128>}, {transform_indices = @transform_2, window_bounds = array<i64: 128, 128>}, {transform_indices = @transform_3, window_bounds = array<i64: 128, 128>}]} {
    %c0_i32 = arith.constant 0 : i32
    %0 = arith.cmpi eq, %arg1, %c0_i32 : i32
    %1 = arith.extui %0 : i1 to i32
    %c0_i32_0 = arith.constant 0 : i32
    %2 = arith.cmpi ne, %1, %c0_i32_0 : i32
    scf.if %2 {
      %cst_14 = arith.constant 0.000000e+00 : f32
      %16 = vector.broadcast %cst_14 : f32 to vector<128x128xf32>
      %c0_15 = arith.constant 0 : index
      %c0_16 = arith.constant 0 : index
      %17 = vector.load %arg6[%c0_15, %c0_16] : memref<128x128xf32, #tpu.memory_space<vmem>>, vector<128x128xf32>
      tpu.vector_store %arg6[%c0_15, %c0_16], %16 {strides = array<i32>} : memref<128x128xf32, #tpu.memory_space<vmem>>, vector<128x128xf32>,
    } else {
    }
    %c0 = arith.constant 0 : index
    %c0_1 = arith.constant 0 : index
    %3 = vector.load %arg2[%c0, %c0_1] : memref<128x128xf32, #tpu.memory_space<vmem>>, vector<128x128xf32>
    %c0_2 = arith.constant 0 : index
    %c0_3 = arith.constant 0 : index
    %4 = vector.load %arg3[%c0_2, %c0_3] : memref<128x128xf32, #tpu.memory_space<vmem>>, vector<128x128xf32>
    %cst = arith.constant dense<0.000000e+00> : vector<128x128xf32>
    %5 = tpu.matmul %3, %4, %cst {dimension_numbers = #tpu.dot_dimension_numbers<[1], [0], [0], [1], [0, 0, 1, 1], [], []>} : vector<128x128xf32>, vector<128x128xf32>, vector<128x128xf32> -> vector<128x128xf32>
    %cst_4 = arith.constant 0.000000e+00 : f32
    %6 = vector.broadcast %cst_4 : f32 to vector<128x128xf32>
    %7 = arith.maximumf %5, %6 : vector<128x128xf32>
    %c0_5 = arith.constant 0 : index
    %c0_6 = arith.constant 0 : index
    %8 = vector.load %arg6[%c0_5, %c0_6] : memref<128x128xf32, #tpu.memory_space<vmem>>, vector<128x128xf32>
    %c0_7 = arith.constant 0 : index
    %c0_8 = arith.constant 0 : index
    %9 = vector.load %arg4[%c0_7, %c0_8] : memref<128x128xf32, #tpu.memory_space<vmem>>, vector<128x128xf32>
    %cst_9 = arith.constant dense<0.000000e+00> : vector<128x128xf32>
    %10 = tpu.matmul %7, %9, %cst_9 {dimension_numbers = #tpu.dot_dimension_numbers<[1], [0], [0], [1], [0, 0, 1, 1], [], []>} : vector<128x128xf32>, vector<128x128xf32>, vector<128x128xf32> -> vector<128x128xf32>
    %11 = arith.addf %8, %10 : vector<128x128xf32>
    %c0_10 = arith.constant 0 : index
    %c0_11 = arith.constant 0 : index
    %12 = vector.load %arg6[%c0_10, %c0_11] : memref<128x128xf32, #tpu.memory_space<vmem>>, vector<128x128xf32>
    tpu.vector_store %arg6[%c0_10, %c0_11], %11 {strides = array<i32>} : memref<128x128xf32, #tpu.memory_space<vmem>>, vector<128x128xf32>,
    %c0_i32_12 = arith.constant 0 : i32
    %13 = arith.cmpi eq, %arg1, %c0_i32_12 : i32
    %14 = arith.extui %13 : i1 to i32
    %c0_i32_13 = arith.constant 0 : i32
    %15 = arith.cmpi ne, %14, %c0_i32_13 : i32
    scf.if %15 {
      %c0_14 = arith.constant 0 : index
      %c0_15 = arith.constant 0 : index
      %16 = vector.load %arg6[%c0_14, %c0_15] : memref<128x128xf32, #tpu.memory_space<vmem>>, vector<128x128xf32>
      %cst_16 = arith.constant 0.000000e+00 : f32
      %17 = vector.broadcast %cst_16 : f32 to vector<128x128xf32>
      %18 = arith.maximumf %16, %17 : vector<128x128xf32>
      %c0_17 = arith.constant 0 : index
      %c0_18 = arith.constant 0 : index
      %19 = vector.load %arg5[%c0_17, %c0_18] : memref<128x128xf32, #tpu.memory_space<vmem>>, vector<128x128xf32>
      tpu.vector_store %arg5[%c0_17, %c0_18], %18 {strides = array<i32>} : memref<128x128xf32, #tpu.memory_space<vmem>>, vector<128x128xf32>,
    } else {
    }
    return
  }
  func.func @transform_0(%arg0: i32, %arg1: i32) -> (i32, i32) {
    %c0_i32 = arith.constant 0 : i32
    %c0_i32_0 = arith.constant 0 : i32
    return %arg0, %c0_i32 : i32, i32
  }
  func.func @transform_1(%arg0: i32, %arg1: i32) -> (i32, i32) {
    %c0_i32 = arith.constant 0 : i32
    %c0_i32_0 = arith.constant 0 : i32
    return %c0_i32, %arg1 : i32, i32
  }
  func.func @transform_2(%arg0: i32, %arg1: i32) -> (i32, i32) {
    %c0_i32 = arith.constant 0 : i32
    %c0_i32_0 = arith.constant 0 : i32
    return %arg1, %c0_i32 : i32, i32
  }
  func.func @transform_3(%arg0: i32, %arg1: i32) -> (i32, i32) {
    %c0_i32 = arith.constant 0 : i32
    %c0_i32_0 = arith.constant 0 : i32
    return %arg0, %c0_i32 : i32, i32
  }
}

</mosaic_0001>

<bundles_post_ra>
// kernel: tpu_custom_call.1
= control target key start
LH: loop header
LB: loop body
LE: loop exit
PB: predicated region body
PF: predicated region fallthrough
CT: control target
= control target key end

     0   :  { %8 = vsyncpa [#allocation4], 0  ;;  %s585_s0 = inlined_call_operand.hbm [shape: f32[128,128], index: 0, kind: input, shape index: {}]   ;;  %s586_s1 = inlined_call_operand.hbm [shape: f32[128,128], index: 1, kind: input, shape index: {}]   ;;  %s587_s2 = inlined_call_operand.hbm [shape: f32[128,128], index: 2, kind: input, shape index: {}]   ;;  %s588_s3 = inlined_call_operand.hbm [shape: f32[128,128], index: 3, kind: output, shape index: {}]  }
   0x1   :  { %9 = vsyncpa [#allocation7], 0 }
   0x2   :  { %10 = vsyncpa [#allocation5], 0  ;;  %s28_s14 = sshll.u32 %s586_s1, 4  ;;  %s535_s15 = smov [#allocation6]   ;;  %s29_s14 = int_to_ptr.hbm [resolvable:$true] %s28_s14 }
   0x3   :  { %s30_s16 = sshll.u32 %s535_s15, 4  ;;  %s15_s19 = sshll.u32 %s585_s0, 4  ;;  %s31_s16 = int_to_ptr.vmem [resolvable:$true] %s30_s16  ;;  %s16_s19 = int_to_ptr.hbm [resolvable:$true] %s15_s19 }
   0x4   :  { %s536_s20 = smov 128   ;;  %s537_s21 = smov 8  }
   0x5   :  { %36 = dma.hbm_to_vmem [thread:$0]  %s29_s14, 2048, %s31_s16, [#allocation7], %s536_s20, %s536_s20, %s537_s21  }
   0x6   :  { %s538_s22 = smov [#allocation3]   ;;  %s41_s1 = sshll.u32 %s587_s2, 4  ;;  %s42_s1 = int_to_ptr.hbm [resolvable:$true] %s41_s1 }
   0x7   :  { %s17_s23 = sshll.u32 %s538_s22, 4  ;;  %s539_s0 = smov [#allocation8]   ;;  %s18_s23 = int_to_ptr.vmem [resolvable:$true] %s17_s23 }
   0x8   :  { %23 = dma.hbm_to_vmem [thread:$0]  %s16_s19, 2048, %s18_s23, [#allocation4], %s536_s20, %s536_s20, %s537_s21  }
   0x9   :  { %s43_s26 = sshll.u32 %s539_s0, 4  ;;  %s44_s26 = int_to_ptr.vmem [resolvable:$true] %s43_s26 }
   0xa   :  { %49 = dma.hbm_to_vmem [thread:$0]  %s42_s1, 2048, %s44_s26, [#allocation7], %s536_s20, %s536_s20, %s537_s21  }
   0xb   :  { %529 = dma.done.wait [#allocation4], 2048  }
   0xc   :  { %530 = vsyncadd [#allocation4], 4294965248 }
   0xd   :  { %531 = dma.done.wait [#allocation7], 4096  }
   0xe   :  { %532 = vsyncadd [#allocation7], 4294963200  ;;  %v113_v0 = vld [vmem:[#allocation6 + $0x78] sm:$0xff]  ;;  %v112_v1 = vld [vmem:[#allocation6 + $0x70] sm:$0xff]  ;;  %s540_s2 = smov [#allocation9]   ;;  %s381_s30 = sshll.u32 %s588_s3, 4  ;;  %s382_s30 = int_to_ptr.hbm [resolvable:$true] %s381_s30 }
   0xf   :  { %395 = vmatpush.msra.mxu2 %v113_v0  ;;  %114 = vmatpush.msra.mxu0 %v113_v0  ;;  %v111_v2 = vld [vmem:[#allocation6 + $0x68] sm:$0xff]  ;;  %v110_v3 = vld [vmem:[#allocation6 + $0x60] sm:$0xff]  ;;  %v109_v4 = vld [vmem:[#allocation6 + $0x58] sm:$0xff]  ;;  %s379_s27 = sshll.u32 %s540_s2, 4  ;;  %s380_s27 = int_to_ptr.vmem [resolvable:$true] %s379_s27 }
  0x10   :  { %v108_v5 = vld [vmem:[#allocation6 + $0x50] sm:$0xff]  ;;  %v107_v6 = vld [vmem:[#allocation6 + $0x48] sm:$0xff]  ;;  %v106_v7 = vld [vmem:[#allocation6 + $0x40] sm:$0xff] }
  0x11   :  { %396 = vmatpush.msra.mxu2 %v112_v1  ;;  %115 = vmatpush.msra.mxu0 %v112_v1  ;;  %v105_v8 = vld [vmem:[#allocation6 + $0x38] sm:$0xff]  ;;  %v104_v9 = vld [vmem:[#allocation6 + $0x30] sm:$0xff]  ;;  %v103_v10 = vld [vmem:[#allocation6 + $0x28] sm:$0xff] }
  0x12   :  { %v102_v11 = vld [vmem:[#allocation6 + $0x20] sm:$0xff]  ;;  %v101_v12 = vld [vmem:[#allocation6 + $0x18] sm:$0xff]  ;;  %v100_v13 = vld [vmem:[#allocation6 + $0x10] sm:$0xff] }
  0x13   :  { %397 = vmatpush.msra.mxu2 %v111_v2  ;;  %116 = vmatpush.msra.mxu0 %v111_v2  ;;  %v99_v14 = vld [vmem:[#allocation6 + $0x8] sm:$0xff]  ;;  %v98_v15 = vld [vmem:[#allocation6] sm:$0xff]  ;;  %v92_v20 = vld [vmem:[#allocation3 + $0x50] sm:$0xff] }
  0x14   :  { %v90_v16 = vld [vmem:[#allocation3 + $0x40] sm:$0xff]  ;;  %v91_v18 = vld [vmem:[#allocation3 + $0x48] sm:$0xff]  ;;  %v84_v21 = vld [vmem:[#allocation3 + $0x10] sm:$0xff] }
  0x15   :  { %398 = vmatpush.msra.mxu2 %v110_v3  ;;  %117 = vmatpush.msra.mxu0 %v110_v3  ;;  %v82_v17 = vld [vmem:[#allocation3] sm:$0xff]  ;;  %v83_v19 = vld [vmem:[#allocation3 + $0x8] sm:$0xff]  ;;  %v93_v22 = vld [vmem:[#allocation3 + $0x58] sm:$0xff] }
  0x16   :  { %v85_v23 = vld [vmem:[#allocation3 + $0x18] sm:$0xff]  ;;  %v225_v25 = vld [vmem:[#allocation8 + $0x70] sm:$0xff]  ;;  %v224_v26 = vld [vmem:[#allocation8 + $0x68] sm:$0xff] }
  0x17   :  { %399 = vmatpush.msra.mxu2 %v109_v4  ;;  %118 = vmatpush.msra.mxu0 %v109_v4  ;;  %v226_v24 = vld [vmem:[#allocation8 + $0x78] sm:$0xff]  ;;  %v223_v27 = vld [vmem:[#allocation8 + $0x60] sm:$0xff]  ;;  %v221_v31 = vld [vmem:[#allocation8 + $0x50] sm:$0xff] }
  0x18   :  { %411 = vmatpush.msra.mxu3 %v226_v24  ;;  %227 = vmatpush.msra.mxu1 %v226_v24  ;;  %v94_v28 = vld [vmem:[#allocation3 + $0x60] sm:$0xff]  ;;  %v222_v30 = vld [vmem:[#allocation8 + $0x58] sm:$0xff]  ;;  %v220_v32 = vld [vmem:[#allocation8 + $0x48] sm:$0xff] }
  0x19   :  { %400 = vmatpush.msra.mxu2 %v108_v5  ;;  %119 = vmatpush.msra.mxu0 %v108_v5  ;;  %v86_v29 = vld [vmem:[#allocation3 + $0x20] sm:$0xff]  ;;  %v95_v34 = vld [vmem:[#allocation3 + $0x68] sm:$0xff]  ;;  %v218_v36 = vld [vmem:[#allocation8 + $0x38] sm:$0xff] }
  0x1a   :  { %412 = vmatpush.msra.mxu3 %v225_v25  ;;  %228 = vmatpush.msra.mxu1 %v225_v25  ;;  %v219_v33 = vld [vmem:[#allocation8 + $0x40] sm:$0xff]  ;;  %v87_v35 = vld [vmem:[#allocation3 + $0x28] sm:$0xff]  ;;  %v217_v37 = vld [vmem:[#allocation8 + $0x30] sm:$0xff] }
  0x1b   :  { %401 = vmatpush.msra.mxu2 %v107_v6  ;;  %120 = vmatpush.msra.mxu0 %v107_v6  ;;  %v216_v38 = vld [vmem:[#allocation8 + $0x28] sm:$0xff]  ;;  %v215_v39 = vld [vmem:[#allocation8 + $0x20] sm:$0xff]  ;;  %v96_v40 = vld [vmem:[#allocation3 + $0x70] sm:$0xff] }
  0x1c   :  { %413 = vmatpush.msra.mxu3 %v224_v26  ;;  %229 = vmatpush.msra.mxu1 %v224_v26  ;;  %v88_v41 = vld [vmem:[#allocation3 + $0x30] sm:$0xff]  ;;  %v214_v42 = vld [vmem:[#allocation8 + $0x18] sm:$0xff]  ;;  %v212_v46 = vld [vmem:[#allocation8 + $0x8] sm:$0xff] }
  0x1d   :  { %402 = vmatpush.msra.mxu2 %v106_v7  ;;  %121 = vmatpush.msra.mxu0 %v106_v7  ;;  %v213_v43 = vld [vmem:[#allocation8 + $0x10] sm:$0xff]  ;;  %v97_v44 = vld [vmem:[#allocation3 + $0x78] sm:$0xff]  ;;  %v211_v47 = vld [vmem:[#allocation8] sm:$0xff] }
  0x1e   :  { %414 = vmatpush.msra.mxu3 %v223_v27  ;;  %230 = vmatpush.msra.mxu1 %v223_v27  ;;  %v89_v45 = vld [vmem:[#allocation3 + $0x38] sm:$0xff] }
  0x1f   :  { %403 = vmatpush.msra.mxu2 %v105_v8  ;;  %122 = vmatpush.msra.mxu0 %v105_v8 }
  0x20   :  { %415 = vmatpush.msra.mxu3 %v222_v30  ;;  %231 = vmatpush.msra.mxu1 %v222_v30 }
  0x21   :  { %404 = vmatpush.msra.mxu2 %v104_v9  ;;  %123 = vmatpush.msra.mxu0 %v104_v9 }
  0x22   :  { %416 = vmatpush.msra.mxu3 %v221_v31  ;;  %232 = vmatpush.msra.mxu1 %v221_v31 }
  0x23   :  { %405 = vmatpush.msra.mxu2 %v103_v10  ;;  %124 = vmatpush.msra.mxu0 %v103_v10 }
  0x24   :  { %417 = vmatpush.msra.mxu3 %v220_v32  ;;  %233 = vmatpush.msra.mxu1 %v220_v32 }
  0x25   :  { %406 = vmatpush.msra.mxu2 %v102_v11  ;;  %125 = vmatpush.msra.mxu0 %v102_v11 }
  0x26   :  { %418 = vmatpush.msra.mxu3 %v219_v33  ;;  %234 = vmatpush.msra.mxu1 %v219_v33 }
  0x27   :  { %407 = vmatpush.msra.mxu2 %v101_v12  ;;  %126 = vmatpush.msra.mxu0 %v101_v12 }
  0x28   :  { %419 = vmatpush.msra.mxu3 %v218_v36  ;;  %235 = vmatpush.msra.mxu1 %v218_v36 }
  0x29   :  { %408 = vmatpush.msra.mxu2 %v100_v13  ;;  %127 = vmatpush.msra.mxu0 %v100_v13 }
  0x2a   :  { %420 = vmatpush.msra.mxu3 %v217_v37  ;;  %236 = vmatpush.msra.mxu1 %v217_v37 }
  0x2b   :  { %409 = vmatpush.msra.mxu2 %v99_v14  ;;  %128 = vmatpush.msra.mxu0 %v99_v14 }
  0x2c   :  { %421 = vmatpush.msra.mxu3 %v216_v38  ;;  %237 = vmatpush.msra.mxu1 %v216_v38 }
  0x2d   :  { %410 = vmatpush.msra.mxu2 %v98_v15  ;;  %129 = vmatpush.msra.mxu0 %v98_v15 }
  0x2e   :  { %154 = vmatmul.f32.vlgmr.msra.gmra.mxu2 %v90_v16  ;;  %130 = vmatmul.f32.vlgmr.msra.gmra.mxu0 %v82_v17 }
  0x2f   :  { %422 = vmatpush.msra.mxu3 %v215_v39  ;;  %238 = vmatpush.msra.mxu1 %v215_v39 }
  0x31   :  { %423 = vmatpush.msra.mxu3 %v214_v42  ;;  %239 = vmatpush.msra.mxu1 %v214_v42 }
  0x33   :  { %424 = vmatpush.msra.mxu3 %v213_v43  ;;  %240 = vmatpush.msra.mxu1 %v213_v43 }
  0x35   :  { %425 = vmatpush.msra.mxu3 %v212_v46  ;;  %241 = vmatpush.msra.mxu1 %v212_v46 }
  0x36   :  { %157 = vmatmul.f32.gmra.mxu2 %v91_v18  ;;  %133 = vmatmul.f32.gmra.mxu0 %v83_v19 }
  0x37   :  { %426 = vmatpush.msra.mxu3 %v211_v47  ;;  %242 = vmatpush.msra.mxu1 %v211_v47 }
  0x3e   :  { %160 = vmatmul.f32.gmra.mxu2 %v92_v20  ;;  %136 = vmatmul.f32.gmra.mxu0 %v84_v21 }
  0x46   :  { %163 = vmatmul.f32.gmra.mxu2 %v93_v22  ;;  %139 = vmatmul.f32.gmra.mxu0 %v85_v23 }
  0x4e   :  { %166 = vmatmul.f32.gmra.mxu2 %v94_v28  ;;  %142 = vmatmul.f32.gmra.mxu0 %v86_v29 }
  0x56   :  { %169 = vmatmul.f32.gmra.mxu2 %v95_v34  ;;  %145 = vmatmul.f32.gmra.mxu0 %v87_v35 }
  0x5e   :  { %172 = vmatmul.f32.gmra.mxu2 %v96_v40  ;;  %148 = vmatmul.f32.gmra.mxu0 %v88_v41 }
  0x66   :  { %175 = vmatmul.f32.gmra.mxu2 %v97_v44  ;;  %151 = vmatmul.f32.gmra.mxu0 %v89_v45 }
  0xab   :  { %v131_v48 = vpop.f32.mrf.mxu0 }
  0xac   :  { %v179_v49 = vmax.f32 %v131_v48, 0.0 }
  0xae   :  { %243 = vmatmul.f32.vlgmr.msra.gmra.mxu1 %v179_v49 }
  0xb1   :  { %v155_v50 = vpop.f32.mrf.mxu2 }
  0xb2   :  { %v187_v51 = vmax.f32 %v155_v50, 0.0 }
  0xb3   :  { %v134_v52 = vpop.f32.mrf.mxu0 }
  0xb4   :  { %267 = vmatmul.f32.vlgmr.msra.gmra.mxu3 %v187_v51  ;;  %v180_v53 = vmax.f32 %v134_v52, 0.0 }
  0xb6   :  { %246 = vmatmul.f32.gmra.mxu1 %v180_v53 }
  0xb9   :  { %v158_v54 = vpop.f32.mrf.mxu2 }
  0xba   :  { %v188_v55 = vmax.f32 %v158_v54, 0.0 }
  0xbb   :  { %v137_v56 = vpop.f32.mrf.mxu0 }
  0xbc   :  { %270 = vmatmul.f32.gmra.mxu3 %v188_v55  ;;  %v181_v57 = vmax.f32 %v137_v56, 0.0 }
  0xbe   :  { %249 = vmatmul.f32.gmra.mxu1 %v181_v57 }
  0xc1   :  { %v161_v58 = vpop.f32.mrf.mxu2 }
  0xc2   :  { %v189_v59 = vmax.f32 %v161_v58, 0.0 }
  0xc3   :  { %v140_v60 = vpop.f32.mrf.mxu0 }
  0xc4   :  { %273 = vmatmul.f32.gmra.mxu3 %v189_v59  ;;  %v182_v61 = vmax.f32 %v140_v60, 0.0 }
  0xc6   :  { %252 = vmatmul.f32.gmra.mxu1 %v182_v61 }
  0xc9   :  { %v164_v62 = vpop.f32.mrf.mxu2 }
  0xca   :  { %v190_v63 = vmax.f32 %v164_v62, 0.0 }
  0xcb   :  { %v143_v0 = vpop.f32.mrf.mxu0 }
  0xcc   :  { %276 = vmatmul.f32.gmra.mxu3 %v190_v63  ;;  %v183_v1 = vmax.f32 %v143_v0, 0.0 }
  0xce   :  { %255 = vmatmul.f32.gmra.mxu1 %v183_v1 }
  0xd1   :  { %v167_v2 = vpop.f32.mrf.mxu2 }
  0xd2   :  { %v191_v3 = vmax.f32 %v167_v2, 0.0 }
  0xd3   :  { %v146_v4 = vpop.f32.mrf.mxu0 }
  0xd4   :  { %279 = vmatmul.f32.gmra.mxu3 %v191_v3  ;;  %v184_v5 = vmax.f32 %v146_v4, 0.0 }
  0xd6   :  { %258 = vmatmul.f32.gmra.mxu1 %v184_v5 }
  0xd9   :  { %v170_v6 = vpop.f32.mrf.mxu2 }
  0xda   :  { %v192_v7 = vmax.f32 %v170_v6, 0.0 }
  0xdb   :  { %v149_v8 = vpop.f32.mrf.mxu0 }
  0xdc   :  { %282 = vmatmul.f32.gmra.mxu3 %v192_v7  ;;  %v185_v9 = vmax.f32 %v149_v8, 0.0 }
  0xde   :  { %261 = vmatmul.f32.gmra.mxu1 %v185_v9 }
  0xe1   :  { %v173_v10 = vpop.f32.mrf.mxu2 }
  0xe2   :  { %v193_v11 = vmax.f32 %v173_v10, 0.0 }
  0xe3   :  { %v152_v12 = vpop.f32.mrf.mxu0 }
  0xe4   :  { %285 = vmatmul.f32.gmra.mxu3 %v193_v11  ;;  %v186_v13 = vmax.f32 %v152_v12, 0.0 }
  0xe6   :  { %264 = vmatmul.f32.gmra.mxu1 %v186_v13 }
  0xe9   :  { %v176_v14 = vpop.f32.mrf.mxu2 }
  0xea   :  { %v194_v15 = vmax.f32 %v176_v14, 0.0 }
  0xec   :  { %288 = vmatmul.f32.gmra.mxu3 %v194_v15 }
 0x12b   :  { %v244_v16 = vpop.f32.mrf.mxu1 }
 0x12c   :  { %v343_v17 = vmax.f32 %v244_v16, 0.0 }
 0x12e   :  { %359 = vst [vmem:[#allocation9] sm:$0xff] %v343_v17 }
 0x133   :  { %v247_v18 = vpop.f32.mrf.mxu1 }
 0x134   :  { %v344_v19 = vmax.f32 %v247_v18, 0.0 }
 0x136   :  { %360 = vst [vmem:[#allocation9 + $0x8] sm:$0xff] %v344_v19 }
 0x137   :  { %v268_v20 = vpop.f32.mrf.mxu3 }
 0x138   :  { %v351_v21 = vmax.f32 %v268_v20, 0.0 }
 0x13a   :  { %367 = vst [vmem:[#allocation9 + $0x40] sm:$0xff] %v351_v21 }
 0x13b   :  { %v250_v22 = vpop.f32.mrf.mxu1 }
 0x13c   :  { %v345_v23 = vmax.f32 %v250_v22, 0.0 }
 0x13e   :  { %361 = vst [vmem:[#allocation9 + $0x10] sm:$0xff] %v345_v23 }
 0x13f   :  { %v271_v24 = vpop.f32.mrf.mxu3 }
 0x140   :  { %v352_v25 = vmax.f32 %v271_v24, 0.0 }
 0x142   :  { %368 = vst [vmem:[#allocation9 + $0x48] sm:$0xff] %v352_v25 }
 0x143   :  { %v253_v26 = vpop.f32.mrf.mxu1 }
 0x144   :  { %v346_v27 = vmax.f32 %v253_v26, 0.0 }
 0x146   :  { %362 = vst [vmem:[#allocation9 + $0x18] sm:$0xff] %v346_v27 }
 0x147   :  { %v274_v28 = vpop.f32.mrf.mxu3 }
 0x148   :  { %v353_v29 = vmax.f32 %v274_v28, 0.0 }
 0x14a   :  { %369 = vst [vmem:[#allocation9 + $0x50] sm:$0xff] %v353_v29 }
 0x14b   :  { %v256_v30 = vpop.f32.mrf.mxu1 }
 0x14c   :  { %v347_v31 = vmax.f32 %v256_v30, 0.0 }
 0x14e   :  { %363 = vst [vmem:[#allocation9 + $0x20] sm:$0xff] %v347_v31 }
 0x14f   :  { %v277_v32 = vpop.f32.mrf.mxu3 }
 0x150   :  { %v354_v33 = vmax.f32 %v277_v32, 0.0 }
 0x152   :  { %370 = vst [vmem:[#allocation9 + $0x58] sm:$0xff] %v354_v33 }
 0x153   :  { %v259_v34 = vpop.f32.mrf.mxu1 }
 0x154   :  { %v348_v35 = vmax.f32 %v259_v34, 0.0 }
 0x156   :  { %364 = vst [vmem:[#allocation9 + $0x28] sm:$0xff] %v348_v35 }
 0x157   :  { %v280_v36 = vpop.f32.mrf.mxu3 }
 0x158   :  { %v355_v37 = vmax.f32 %v280_v36, 0.0 }
 0x15a   :  { %371 = vst [vmem:[#allocation9 + $0x60] sm:$0xff] %v355_v37 }
 0x15b   :  { %v262_v38 = vpop.f32.mrf.mxu1 }
 0x15c   :  { %v349_v39 = vmax.f32 %v262_v38, 0.0 }
 0x15e   :  { %365 = vst [vmem:[#allocation9 + $0x30] sm:$0xff] %v349_v39 }
 0x15f   :  { %v283_v40 = vpop.f32.mrf.mxu3 }
 0x160   :  { %v356_v41 = vmax.f32 %v283_v40, 0.0 }
 0x162   :  { %372 = vst [vmem:[#allocation9 + $0x68] sm:$0xff] %v356_v41 }
 0x163   :  { %v265_v42 = vpop.f32.mrf.mxu1 }
 0x164   :  { %v350_v43 = vmax.f32 %v265_v42, 0.0 }
 0x166   :  { %366 = vst [vmem:[#allocation9 + $0x38] sm:$0xff] %v350_v43 }
 0x167   :  { %v286_v44 = vpop.f32.mrf.mxu3 }
 0x168   :  { %v357_v45 = vmax.f32 %v286_v44, 0.0 }
 0x16a   :  { %373 = vst [vmem:[#allocation9 + $0x70] sm:$0xff] %v357_v45 }
 0x16f   :  { %v289_v46 = vpop.f32.mrf.mxu3 }
 0x170   :  { %v358_v47 = vmax.f32 %v289_v46, 0.0 }
 0x172   :  { %374 = vst [vmem:[#allocation9 + $0x78] sm:$0xff] %v358_v47 }
 0x173   :  { %387 = dma.vmem_to_hbm [thread:$0]  %s380_s27, 2048, %s382_s30, [#allocation5], %s536_s20, %s536_s20, %s537_s21  }
 0x174   :  { %533 = dma.done.wait [#allocation5], 2048  }
 0x175   :  { %534 = vsyncadd [#allocation5], 4294965248 }
 0x176   :  { %392 = vsyncpa [#allocation4], 1 }
 0x177   :  { %393 = vsyncpa [#allocation7], 1 }
 0x178   :  { %394 = vsyncpa [#allocation5], 1 }

</bundles_post_ra>
